<compile_context>
chip_gen: v7x
topology: tpu7x:2x2x1
jax: 0.10.0
libtpu: 0.0.40
codegen_flags: <defaults>
</compile_context>

<pallas_src>
import math

import jax
import jax.numpy as jnp
from jax.experimental import pallas as pl
from jax.experimental.pallas import tpu as pltpu

LANE = 128


def _round_up(n, m):
    return ((n + m - 1) // m) * m


# ----------------------------------------------------------------------------
# Static plan: layer order, real & padded dims.
# Stack order: encoder layers | fused mu|sigma head | decoder_input | decoder layers
# ----------------------------------------------------------------------------
def plan_vae(input_size, layers, latent_size):
    in_p = _round_up(input_size, LANE)
    lat_p = _round_up(latent_size, LANE)

    enc_sizes = [input_size] + list(layers) + [latent_size]
    dec_sizes = [latent_size] + list(reversed(layers)) + [input_size]

    specs = []  # (kind, in_features, out_features, in_pad, out_pad)
    for i in range(len(enc_sizes) - 1):
        specs.append(("enc", enc_sizes[i], enc_sizes[i + 1],
                      _round_up(enc_sizes[i], LANE),
                      _round_up(enc_sizes[i + 1], LANE)))
    # fused mu | sigma head: output slab is [mu (lat_p lanes) | log_var (lat_p lanes)]
    specs.append(("head", latent_size, latent_size, lat_p, 2 * lat_p))
    specs.append(("dec_in", latent_size, latent_size, lat_p, lat_p))
    for i in range(len(dec_sizes) - 1):
        specs.append(("dec", dec_sizes[i], dec_sizes[i + 1],
                      _round_up(dec_sizes[i], LANE),
                      _round_up(dec_sizes[i + 1], LANE)))

    return dict(
        input_size=input_size,
        latent_size=latent_size,
        n_enc=len(enc_sizes) - 1,
        n_dec=len(dec_sizes) - 1,
        in_p=in_p,
        lat_p=lat_p,
        pi=max(s[3] for s in specs),
        po=max(s[4] for s in specs),
        layer_specs=tuple(specs),
    )


# ----------------------------------------------------------------------------
# Parameters: one packed bf16 weight stack + one f32 bias stack.
# Padded rows/cols are zero -> padded lanes of every activation stay zero, so
# full-width padded matmuls are numerically identical to the unpadded network.
# PyTorch nn.Linear default init: U(-1/sqrt(in_features), 1/sqrt(in_features)).
# ----------------------------------------------------------------------------
def build_packed_params(key, plan):
    specs = plan["layer_specs"]
    n = len(specs)
    pi, po = plan["pi"], plan["po"]
    lat_p = plan["lat_p"]

    w_stack = jnp.zeros((n, pi, po), jnp.float32)
    b_stack = jnp.zeros((n, 1, po), jnp.float32)

    def linear_init(k, fan_in, fan_out):
        kw, kb = jax.random.split(k)
        bound = 1.0 / math.sqrt(fan_in)
        w = jax.random.uniform(kw, (fan_in, fan_out), jnp.float32, -bound, bound)
        b = jax.random.uniform(kb, (fan_out,), jnp.float32, -bound, bound)
        return w, b

    for li, (kind, f_in, f_out, _, _) in enumerate(specs):
        if kind == "head":
            key, k_mu, k_sg = jax.random.split(key, 3)
            w_mu, b_mu = linear_init(k_mu, f_in, f_out)
            w_sg, b_sg = linear_init(k_sg, f_in, f_out)
            w_stack = w_stack.at[li, :f_in, :f_out].set(w_mu)
            w_stack = w_stack.at[li, :f_in, lat_p:lat_p + f_out].set(w_sg)
            b_stack = b_stack.at[li, 0, :f_out].set(b_mu)
            b_stack = b_stack.at[li, 0, lat_p:lat_p + f_out].set(b_sg)
        else:
            key, k = jax.random.split(key)
            w, b = linear_init(k, f_in, f_out)
            w_stack = w_stack.at[li, :f_in, :f_out].set(w)
            b_stack = b_stack.at[li, 0, :f_out].set(b)

    return w_stack.astype(jnp.bfloat16), b_stack


# ----------------------------------------------------------------------------
# Kernel
# ----------------------------------------------------------------------------
def make_vae_kernel(plan):
    specs = plan["layer_specs"]
    n_enc, n_dec = plan["n_enc"], plan["n_dec"]
    lat_p = plan["lat_p"]

    def kernel(x_ref, eps_ref, w_ref, b_ref, xhat_ref, mlv_ref):
        def linear(h_f32, li):
            _, _, _, in_pad, out_pad = specs[li]
            w = w_ref[li, :in_pad, :out_pad]          # bf16 (in_pad, out_pad), static slice
            b = b_ref[li, :, :out_pad]                # f32  (1, out_pad)
            return jnp.dot(h_f32.astype(jnp.bfloat16), w,
                           preferred_element_type=jnp.float32) + b

        li = 0
        # ----- encoder MLP -----
        h = x_ref[...]                                # (TILE_B, IN_P) f32
        for i in range(n_enc):
            h = linear(h, li); li += 1
            if i < n_enc - 1:
                h = jnp.maximum(h, 0.0)               # ReLU on f32 accumulator (VPU)

        # ----- fused mu | log_var head (single matmul, lane-dense output) -----
        mlv = linear(h, li); li += 1                  # (TILE_B, 2*LAT_P) f32
        mlv_ref[...] = mlv
        mu = mlv[:, :lat_p]
        log_var = mlv[:, lat_p:]

        # ----- reparametrize: z = eps * exp(0.5*log_var) + mu -----
        # (padded eps/mu lanes are zero -> padded z lanes stay zero)
        z = eps_ref[...] * jnp.exp(0.5 * log_var) + mu

        # ----- decoder_input + decoder MLP -----
        d = linear(z, li); li += 1
        for i in range(n_dec):
            d = linear(d, li); li += 1
            if i < n_dec - 1:
                d = jnp.maximum(d, 0.0)

        xhat_ref[...] = d                             # (TILE_B, IN_P) f32

    return kernel


# ----------------------------------------------------------------------------
# Wrapper: batch grid, resident packed weights, lane-dense padded outputs.
# ----------------------------------------------------------------------------
def make_vae_forward(plan, tile_b=None):
    in_p, lat_p = plan["in_p"], plan["lat_p"]
    pi, po = plan["pi"], plan["po"]
    n_layers = len(plan["layer_specs"])
    input_size, latent_size = plan["input_size"], plan["latent_size"]
    kernel = make_vae_kernel(plan)

    @jax.jit
    def forward(x, eps, w_stack, b_stack):
        B = x.shape[0]
        tb = tile_b if tile_b is not None else min(512, _round_up(B, 8))
        b_pad = _round_up(max(B, tb), tb)

        x_p = jnp.pad(x.astype(jnp.float32),
                      ((0, b_pad - B), (0, in_p - input_size)))
        e_p = jnp.pad(eps.astype(jnp.float32),
                      ((0, b_pad - B), (0, lat_p - latent_size)))

        xhat_p, mlv_p = pl.pallas_call(
            kernel,
            grid=(b_pad // tb,),
            in_specs=[
                pl.BlockSpec((tb, in_p), lambda i: (i, 0)),
                pl.BlockSpec((tb, lat_p), lambda i: (i, 0)),
                # constant index_map -> weights/biases stay VMEM-resident
                pl.BlockSpec((n_layers, pi, po), lambda i: (0, 0, 0)),
                pl.BlockSpec((n_layers, 1, po), lambda i: (0, 0, 0)),
            ],
            out_specs=(
                pl.BlockSpec((tb, in_p), lambda i: (i, 0)),
                pl.BlockSpec((tb, 2 * lat_p), lambda i: (i, 0)),
            ),
            out_shape=(
                jax.ShapeDtypeStruct((b_pad, in_p), jnp.float32),
                jax.ShapeDtypeStruct((b_pad, 2 * lat_p), jnp.float32),
            ),
            compiler_params=pltpu.CompilerParams(
                dimension_semantics=("parallel",),     # megacore sharding on v7x
                vmem_limit_bytes=32 << 20,             # safe on 64 MiB v7x VMEM
            ),
        )(x_p, e_p, w_stack, b_stack)

        x_hat = xhat_p[:B, :input_size]
        mu = mlv_p[:B, :latent_size]
        log_var = mlv_p[:B, lat_p:lat_p + latent_size]
        # forward returns (x_hat, x, mu, log_var) like the PyTorch module
        return x_hat, x, mu, log_var

    return forward


# ----------------------------------------------------------------------------
# Plain-JAX reference on the same packed bf16 parameters.
# ----------------------------------------------------------------------------
def vae_forward_reference(x, eps, plan, w_stack, b_stack):
    specs = plan["layer_specs"]
    latent, lat_p = plan["latent_size"], plan["lat_p"]
    input_size, in_p = plan["input_size"], plan["in_p"]

    def linear(h, li):
        _, _, _, in_pad, out_pad = specs[li]
        w = w_stack[li, :in_pad, :out_pad].astype(jnp.float32)
        b = b_stack[li, 0, :out_pad]
        return h.astype(jnp.bfloat16).astype(jnp.float32) @ w + b

    h = jnp.pad(x.astype(jnp.float32), ((0, 0), (0, in_p - input_size)))
    li = 0
    for i in range(plan["n_enc"]):
        h = linear(h, li); li += 1
        if i < plan["n_enc"] - 1:
            h = jnp.maximum(h, 0.0)
    mlv = linear(h, li); li += 1
    mu = mlv[:, :latent]
    log_var = mlv[:, lat_p:lat_p + latent]
    eps_p = jnp.pad(eps.astype(jnp.float32), ((0, 0), (0, lat_p - latent)))
    z = eps_p * jnp.exp(0.5 * mlv[:, lat_p:]) + mlv[:, :lat_p]
    d = linear(z, li); li += 1
    for i in range(plan["n_dec"]):
        d = linear(d, li); li += 1
        if i < plan["n_dec"] - 1:
            d = jnp.maximum(d, 0.0)
    return d[:, :input_size], x, mu, log_var


if __name__ == "__main__":
    # Small shapes consistent with the module (flat feature vectors -> MLP VAE).
    INPUT_SIZE = 32
    LAYERS = (64, 48)
    LATENT = 16
    B = 20        # not a multiple of the tile -> exercises batch padding
    TILE_B = 8    # small tile so the demo runs a multi-step pipelined grid

    key = jax.random.PRNGKey(0)
    kx, keps, kparams = jax.random.split(key, 3)
    x = jax.random.normal(kx, (B, INPUT_SIZE), jnp.float32)
    # reparametrization noise (torch.randn_like(std)) supplied deterministically
    eps = jax.random.normal(keps, (B, LATENT), jnp.float32)

    plan = plan_vae(INPUT_SIZE, LAYERS, LATENT)
    w_stack, b_stack = build_packed_params(kparams, plan)
    forward = make_vae_forward(plan, tile_b=TILE_B)

    outs = jax.block_until_ready(forward(x, eps, w_stack, b_stack))
    x_hat, x_out, mu, log_var = outs

    # correctness check against a plain-JAX reference on the same bf16 params
    ref = vae_forward_reference(x, eps, plan, w_stack, b_stack)
    for name, got, want in zip(("x_hat", "x", "mu", "log_var"), outs, ref):
        assert got.shape == want.shape, (name, got.shape, want.shape)
        assert jnp.allclose(got, want, atol=1e-3, rtol=1e-3), f"mismatch in {name}"

    # TODO(synk): loss_function / sample are training/sampling utilities, not
    # part of the forward pass, and are left to the host-side JAX wrapper.
    print("KERNEL_OK")
</pallas_src>

<mosaic_0001>
module attributes {stable_mosaic.version = 11 : i64} {
  func.func @kernel(%arg0: i32, %arg1: memref<8x128xf32, #tpu.memory_space<vmem>>, %arg2: memref<8x128xf32, #tpu.memory_space<vmem>>, %arg3: memref<8x128x256xbf16, #tpu.memory_space<vmem>>, %arg4: memref<8x1x256xf32, #tpu.memory_space<vmem>>, %arg5: memref<8x128xf32, #tpu.memory_space<vmem>>, %arg6: memref<8x256xf32, #tpu.memory_space<vmem>>) attributes {dimension_semantics = [#tpu.dimension_semantics<parallel>], iteration_bounds = array<i64: 3>, scalar_prefetch = 0 : i64, scratch_operands = 0 : i64, tpu.core_type = #tpu.core_type<tc>, window_params = [{transform_indices = @transform_0, window_bounds = array<i64: 8, 128>}, {transform_indices = @transform_1, window_bounds = array<i64: 8, 128>}, {pipeline_mode = #tpu.pipeline_mode<synchronous>, transform_indices = @transform_2, window_bounds = array<i64: 8, 128, 256>}, {pipeline_mode = #tpu.pipeline_mode<synchronous>, transform_indices = @transform_3, window_bounds = array<i64: 8, 1, 256>}, {transform_indices = @transform_4, window_bounds = array<i64: 8, 128>}, {transform_indices = @transform_5, window_bounds = array<i64: 8, 256>}]} {
    %c0 = arith.constant 0 : index
    %c0_0 = arith.constant 0 : index
    %0 = vector.load %arg1[%c0, %c0_0] : memref<8x128xf32, #tpu.memory_space<vmem>>, vector<8x128xf32>
    %c0_1 = arith.constant 0 : index
    %c0_2 = arith.constant 0 : index
    %c0_3 = arith.constant 0 : index
    %1 = vector.load %arg3[%c0_1, %c0_2, %c0_3] : memref<8x128x256xbf16, #tpu.memory_space<vmem>>, vector<1x128x128xbf16>
    %2 = vector.shape_cast %1 : vector<1x128x128xbf16> to vector<128x128xbf16>
    %c0_4 = arith.constant 0 : index
    %c0_5 = arith.constant 0 : index
    %c0_6 = arith.constant 0 : index
    %3 = vector.load %arg4[%c0_4, %c0_5, %c0_6] : memref<8x1x256xf32, #tpu.memory_space<vmem>>, vector<1x1x128xf32>
    %4 = vector.shape_cast %3 : vector<1x1x128xf32> to vector<1x128xf32>
    %5 = arith.truncf %0 : vector<8x128xf32> to vector<8x128xbf16>
    %cst = arith.constant dense<0.000000e+00> : vector<8x128xf32>
    %6 = tpu.matmul %5, %2, %cst {dimension_numbers = #tpu.dot_dimension_numbers<[1], [0], [0], [1], [0, 0, 1, 1], [], []>} : vector<8x128xbf16>, vector<128x128xbf16>, vector<8x128xf32> -> vector<8x128xf32>
    %7 = vector.broadcast %4 : vector<1x128xf32> to vector<8x128xf32>
    %8 = arith.addf %6, %7 : vector<8x128xf32>
    %cst_7 = arith.constant 0.000000e+00 : f32
    %9 = vector.broadcast %cst_7 : f32 to vector<8x128xf32>
    %10 = arith.maximumf %8, %9 : vector<8x128xf32>
    %c1 = arith.constant 1 : index
    %c0_8 = arith.constant 0 : index
    %c0_9 = arith.constant 0 : index
    %11 = vector.load %arg3[%c1, %c0_8, %c0_9] : memref<8x128x256xbf16, #tpu.memory_space<vmem>>, vector<1x128x128xbf16>
    %12 = vector.shape_cast %11 : vector<1x128x128xbf16> to vector<128x128xbf16>
    %c1_10 = arith.constant 1 : index
    %c0_11 = arith.constant 0 : index
    %c0_12 = arith.constant 0 : index
    %13 = vector.load %arg4[%c1_10, %c0_11, %c0_12] : memref<8x1x256xf32, #tpu.memory_space<vmem>>, vector<1x1x128xf32>
    %14 = vector.shape_cast %13 : vector<1x1x128xf32> to vector<1x128xf32>
    %15 = arith.truncf %10 : vector<8x128xf32> to vector<8x128xbf16>
    %cst_13 = arith.constant dense<0.000000e+00> : vector<8x128xf32>
    %16 = tpu.matmul %15, %12, %cst_13 {dimension_numbers = #tpu.dot_dimension_numbers<[1], [0], [0], [1], [0, 0, 1, 1], [], []>} : vector<8x128xbf16>, vector<128x128xbf16>, vector<8x128xf32> -> vector<8x128xf32>
    %17 = vector.broadcast %14 : vector<1x128xf32> to vector<8x128xf32>
    %18 = arith.addf %16, %17 : vector<8x128xf32>
    %cst_14 = arith.constant 0.000000e+00 : f32
    %19 = vector.broadcast %cst_14 : f32 to vector<8x128xf32>
    %20 = arith.maximumf %18, %19 : vector<8x128xf32>
    %c2 = arith.constant 2 : index
    %c0_15 = arith.constant 0 : index
    %c0_16 = arith.constant 0 : index
    %21 = vector.load %arg3[%c2, %c0_15, %c0_16] : memref<8x128x256xbf16, #tpu.memory_space<vmem>>, vector<1x128x128xbf16>
    %22 = vector.shape_cast %21 : vector<1x128x128xbf16> to vector<128x128xbf16>
    %c2_17 = arith.constant 2 : index
    %c0_18 = arith.constant 0 : index
    %c0_19 = arith.constant 0 : index
    %23 = vector.load %arg4[%c2_17, %c0_18, %c0_19] : memref<8x1x256xf32, #tpu.memory_space<vmem>>, vector<1x1x128xf32>
    %24 = vector.shape_cast %23 : vector<1x1x128xf32> to vector<1x128xf32>
    %25 = arith.truncf %20 : vector<8x128xf32> to vector<8x128xbf16>
    %cst_20 = arith.constant dense<0.000000e+00> : vector<8x128xf32>
    %26 = tpu.matmul %25, %22, %cst_20 {dimension_numbers = #tpu.dot_dimension_numbers<[1], [0], [0], [1], [0, 0, 1, 1], [], []>} : vector<8x128xbf16>, vector<128x128xbf16>, vector<8x128xf32> -> vector<8x128xf32>
    %27 = vector.broadcast %24 : vector<1x128xf32> to vector<8x128xf32>
    %28 = arith.addf %26, %27 : vector<8x128xf32>
    %c3 = arith.constant 3 : index
    %c0_21 = arith.constant 0 : index
    %c0_22 = arith.constant 0 : index
    %29 = vector.load %arg3[%c3, %c0_21, %c0_22] : memref<8x128x256xbf16, #tpu.memory_space<vmem>>, vector<1x128x256xbf16>
    %30 = vector.shape_cast %29 : vector<1x128x256xbf16> to vector<128x256xbf16>
    %c3_23 = arith.constant 3 : index
    %c0_24 = arith.constant 0 : index
    %c0_25 = arith.constant 0 : index
    %31 = vector.load %arg4[%c3_23, %c0_24, %c0_25] : memref<8x1x256xf32, #tpu.memory_space<vmem>>, vector<1x1x256xf32>
    %32 = vector.shape_cast %31 : vector<1x1x256xf32> to vector<1x256xf32>
    %33 = arith.truncf %28 : vector<8x128xf32> to vector<8x128xbf16>
    %cst_26 = arith.constant dense<0.000000e+00> : vector<8x256xf32>
    %34 = tpu.matmul %33, %30, %cst_26 {dimension_numbers = #tpu.dot_dimension_numbers<[1], [0], [0], [1], [0, 0, 1, 1], [], []>} : vector<8x128xbf16>, vector<128x256xbf16>, vector<8x256xf32> -> vector<8x256xf32>
    %35 = vector.broadcast %32 : vector<1x256xf32> to vector<8x256xf32>
    %36 = arith.addf %34, %35 : vector<8x256xf32>
    %c0_27 = arith.constant 0 : index
    %c0_28 = arith.constant 0 : index
    %37 = vector.load %arg6[%c0_27, %c0_28] : memref<8x256xf32, #tpu.memory_space<vmem>>, vector<8x256xf32>
    tpu.vector_store %arg6[%c0_27, %c0_28], %36 {strides = array<i32>} : memref<8x256xf32, #tpu.memory_space<vmem>>, vector<8x256xf32>,
    %38 = vector.extract_strided_slice %36 {offsets = [0, 0], sizes = [8, 128], strides = [1, 1]} : vector<8x256xf32> to vector<8x128xf32>
    %39 = vector.extract_strided_slice %36 {offsets = [0, 128], sizes = [8, 128], strides = [1, 1]} : vector<8x256xf32> to vector<8x128xf32>
    %c0_29 = arith.constant 0 : index
    %c0_30 = arith.constant 0 : index
    %40 = vector.load %arg2[%c0_29, %c0_30] : memref<8x128xf32, #tpu.memory_space<vmem>>, vector<8x128xf32>
    %cst_31 = arith.constant 5.000000e-01 : f32
    %41 = vector.broadcast %cst_31 : f32 to vector<8x128xf32>
    %42 = arith.mulf %41, %39 : vector<8x128xf32>
    %43 = math.exp %42 : vector<8x128xf32>
    %44 = arith.mulf %40, %43 : vector<8x128xf32>
    %45 = arith.addf %44, %38 : vector<8x128xf32>
    %c4 = arith.constant 4 : index
    %c0_32 = arith.constant 0 : index
    %c0_33 = arith.constant 0 : index
    %46 = vector.load %arg3[%c4, %c0_32, %c0_33] : memref<8x128x256xbf16, #tpu.memory_space<vmem>>, vector<1x128x128xbf16>
    %47 = vector.shape_cast %46 : vector<1x128x128xbf16> to vector<128x128xbf16>
    %c4_34 = arith.constant 4 : index
    %c0_35 = arith.constant 0 : index
    %c0_36 = arith.constant 0 : index
    %48 = vector.load %arg4[%c4_34, %c0_35, %c0_36] : memref<8x1x256xf32, #tpu.memory_space<vmem>>, vector<1x1x128xf32>
    %49 = vector.shape_cast %48 : vector<1x1x128xf32> to vector<1x128xf32>
    %50 = arith.truncf %45 : vector<8x128xf32> to vector<8x128xbf16>
    %cst_37 = arith.constant dense<0.000000e+00> : vector<8x128xf32>
    %51 = tpu.matmul %50, %47, %cst_37 {dimension_numbers = #tpu.dot_dimension_numbers<[1], [0], [0], [1], [0, 0, 1, 1], [], []>} : vector<8x128xbf16>, vector<128x128xbf16>, vector<8x128xf32> -> vector<8x128xf32>
    %52 = vector.broadcast %49 : vector<1x128xf32> to vector<8x128xf32>
    %53 = arith.addf %51, %52 : vector<8x128xf32>
    %c5 = arith.constant 5 : index
    %c0_38 = arith.constant 0 : index
    %c0_39 = arith.constant 0 : index
    %54 = vector.load %arg3[%c5, %c0_38, %c0_39] : memref<8x128x256xbf16, #tpu.memory_space<vmem>>, vector<1x128x128xbf16>
    %55 = vector.shape_cast %54 : vector<1x128x128xbf16> to vector<128x128xbf16>
    %c5_40 = arith.constant 5 : index
    %c0_41 = arith.constant 0 : index
    %c0_42 = arith.constant 0 : index
    %56 = vector.load %arg4[%c5_40, %c0_41, %c0_42] : memref<8x1x256xf32, #tpu.memory_space<vmem>>, vector<1x1x128xf32>
    %57 = vector.shape_cast %56 : vector<1x1x128xf32> to vector<1x128xf32>
    %58 = arith.truncf %53 : vector<8x128xf32> to vector<8x128xbf16>
    %cst_43 = arith.constant dense<0.000000e+00> : vector<8x128xf32>
    %59 = tpu.matmul %58, %55, %cst_43 {dimension_numbers = #tpu.dot_dimension_numbers<[1], [0], [0], [1], [0, 0, 1, 1], [], []>} : vector<8x128xbf16>, vector<128x128xbf16>, vector<8x128xf32> -> vector<8x128xf32>
    %60 = vector.broadcast %57 : vector<1x128xf32> to vector<8x128xf32>
    %61 = arith.addf %59, %60 : vector<8x128xf32>
    %cst_44 = arith.constant 0.000000e+00 : f32
    %62 = vector.broadcast %cst_44 : f32 to vector<8x128xf32>
    %63 = arith.maximumf %61, %62 : vector<8x128xf32>
    %c6 = arith.constant 6 : index
    %c0_45 = arith.constant 0 : index
    %c0_46 = arith.constant 0 : index
    %64 = vector.load %arg3[%c6, %c0_45, %c0_46] : memref<8x128x256xbf16, #tpu.memory_space<vmem>>, vector<1x128x128xbf16>
    %65 = vector.shape_cast %64 : vector<1x128x128xbf16> to vector<128x128xbf16>
    %c6_47 = arith.constant 6 : index
    %c0_48 = arith.constant 0 : index
    %c0_49 = arith.constant 0 : index
    %66 = vector.load %arg4[%c6_47, %c0_48, %c0_49] : memref<8x1x256xf32, #tpu.memory_space<vmem>>, vector<1x1x128xf32>
    %67 = vector.shape_cast %66 : vector<1x1x128xf32> to vector<1x128xf32>
    %68 = arith.truncf %63 : vector<8x128xf32> to vector<8x128xbf16>
    %cst_50 = arith.constant dense<0.000000e+00> : vector<8x128xf32>
    %69 = tpu.matmul %68, %65, %cst_50 {dimension_numbers = #tpu.dot_dimension_numbers<[1], [0], [0], [1], [0, 0, 1, 1], [], []>} : vector<8x128xbf16>, vector<128x128xbf16>, vector<8x128xf32> -> vector<8x128xf32>
    %70 = vector.broadcast %67 : vector<1x128xf32> to vector<8x128xf32>
    %71 = arith.addf %69, %70 : vector<8x128xf32>
    %cst_51 = arith.constant 0.000000e+00 : f32
    %72 = vector.broadcast %cst_51 : f32 to vector<8x128xf32>
    %73 = arith.maximumf %71, %72 : vector<8x128xf32>
    %c7 = arith.constant 7 : index
    %c0_52 = arith.constant 0 : index
    %c0_53 = arith.constant 0 : index
    %74 = vector.load %arg3[%c7, %c0_52, %c0_53] : memref<8x128x256xbf16, #tpu.memory_space<vmem>>, vector<1x128x128xbf16>
    %75 = vector.shape_cast %74 : vector<1x128x128xbf16> to vector<128x128xbf16>
    %c7_54 = arith.constant 7 : index
    %c0_55 = arith.constant 0 : index
    %c0_56 = arith.constant 0 : index
    %76 = vector.load %arg4[%c7_54, %c0_55, %c0_56] : memref<8x1x256xf32, #tpu.memory_space<vmem>>, vector<1x1x128xf32>
    %77 = vector.shape_cast %76 : vector<1x1x128xf32> to vector<1x128xf32>
    %78 = arith.truncf %73 : vector<8x128xf32> to vector<8x128xbf16>
    %cst_57 = arith.constant dense<0.000000e+00> : vector<8x128xf32>
    %79 = tpu.matmul %78, %75, %cst_57 {dimension_numbers = #tpu.dot_dimension_numbers<[1], [0], [0], [1], [0, 0, 1, 1], [], []>} : vector<8x128xbf16>, vector<128x128xbf16>, vector<8x128xf32> -> vector<8x128xf32>
    %80 = vector.broadcast %77 : vector<1x128xf32> to vector<8x128xf32>
    %81 = arith.addf %79, %80 : vector<8x128xf32>
    %c0_58 = arith.constant 0 : index
    %c0_59 = arith.constant 0 : index
    %82 = vector.load %arg5[%c0_58, %c0_59] : memref<8x128xf32, #tpu.memory_space<vmem>>, vector<8x128xf32>
    tpu.vector_store %arg5[%c0_58, %c0_59], %81 {strides = array<i32>} : memref<8x128xf32, #tpu.memory_space<vmem>>, vector<8x128xf32>,
    return
  }
  func.func @transform_0(%arg0: i32) -> (i32, i32) {
    %c0_i32 = arith.constant 0 : i32
    %c0_i32_0 = arith.constant 0 : i32
    return %arg0, %c0_i32 : i32, i32
  }
  func.func @transform_1(%arg0: i32) -> (i32, i32) {
    %c0_i32 = arith.constant 0 : i32
    %c0_i32_0 = arith.constant 0 : i32
    return %arg0, %c0_i32 : i32, i32
  }
  func.func @transform_2(%arg0: i32) -> (i32, i32, i32) {
    %c0_i32 = arith.constant 0 : i32
    %c0_i32_0 = arith.constant 0 : i32
    %c0_i32_1 = arith.constant 0 : i32
    %c0_i32_2 = arith.constant 0 : i32
    return %c0_i32, %c0_i32_0, %c0_i32_1 : i32, i32, i32
  }
  func.func @transform_3(%arg0: i32) -> (i32, i32, i32) {
    %c0_i32 = arith.constant 0 : i32
    %c0_i32_0 = arith.constant 0 : i32
    %c0_i32_1 = arith.constant 0 : i32
    %c0_i32_2 = arith.constant 0 : i32
    return %c0_i32, %c0_i32_0, %c0_i32_1 : i32, i32, i32
  }
  func.func @transform_4(%arg0: i32) -> (i32, i32) {
    %c0_i32 = arith.constant 0 : i32
    %c0_i32_0 = arith.constant 0 : i32
    return %arg0, %c0_i32 : i32, i32
  }
  func.func @transform_5(%arg0: i32) -> (i32, i32) {
    %c0_i32 = arith.constant 0 : i32
    %c0_i32_0 = arith.constant 0 : i32
    return %arg0, %c0_i32 : i32, i32
  }
}

</mosaic_0001>

<bundles_post_ra>
// kernel: forward.1
= control target key start
LH: loop header
LB: loop body
LE: loop exit
PB: predicated region body
PF: predicated region fallthrough
CT: control target
= control target key end

     0   :  { %11 = vsyncpa [#allocation3], 0  ;;  %s2176_s0 = inlined_call_operand.vmem [shape: f32[24,128], index: 0, kind: input, shape index: {}]   ;;  %s2177_s1 = inlined_call_operand.vmem [shape: f32[24,128], index: 1, kind: input, shape index: {}]   ;;  %s2178_s2 = inlined_call_operand.hbm [shape: bf16[8,128,256], index: 2, kind: input, shape index: {}]   ;;  %s2179_s3 = inlined_call_operand.vmem [shape: f32[8,1,256], index: 3, kind: input, shape index: {}]   ;;  %s2180_s4 = inlined_call_operand.hbm [shape: f32[24,128], index: 4, kind: output, shape index: {0}]   ;;  %s2181_s5 = inlined_call_operand.vmem [shape: f32[24,256], index: 5, kind: output, shape index: {1}]  }
   0x1   :  { %12 = vsyncpa [#allocation4], 0 }
   0x2   :  { %14 = vsyncpa [#allocation4 + $0x1], 0  ;;  %s1933_s18 = smov 0   ;;  %s1935_s19 = smov 0  }
   0x3   :  { %s1937_s20 = smov 0   ;;  %s1939_s21 = smov 0  }
   0x4 LB: > { %s1954_s22 = sadd.s32 4294967295, %s1894_s21   ;;  %s1358_s23 = sadd.s32 4294967294, %s1894_s21   ;;  %s1894_s21 = sphi %s1939_s21, %s2197_s21   ;;  %s1890_s20 = sphi %s1937_s20, %s2196_s20   ;;  %s1886_s19 = sphi %s1935_s19, %s2195_s19   ;;  %s1882_s18 = sphi %s1933_s18, %s2194_s18  }
   0x5   : > { %s1958_s24 = sadd.s32 1, %s1894_s21   ;;  %s121_s25 = sadd.s32 1, %s1890_s20 }
   0x6   : > { %s118_s26 = ssub.s32 %s1894_s21, %s1958_s24  ;;  %p131_p0 = scmp.ne.s32.totalorder %s1890_s20, %s1886_s19 }
   0x7   : > { %p119_p1 = scmp.eq.s32.totalorder %s118_s26, 0  ;;  %p132_p2 = scmp.eq.s32.totalorder %s1954_s22, 2 }
   0x8   : > { %p137_p3 = scmp.ne.s32.totalorder %s1886_s19, %s1882_s18  ;;  %p138_p4 = scmp.eq.s32.totalorder %s1358_s23, 2 }
   0x9   : > { %s1969_s27 = scalar_select %p119_p1, %s1890_s20, %s121_s25  }
   0xa   : > { %p1971_p5 = por %p132_p2, %p131_p0  ;;  %p1975_p6 = por %p138_p4, %p137_p3 }
   0xb   : > { %p1359_p7 = scmp.ge.s32.totalorder %s1894_s21, 1  ;;  %p171_p8 = scmp.lt.s32.totalorder %s1894_s21, 4 }
   0xc   : > { %s2185_s28 = scalar_select %p1971_p5, 1, 0 }
   0xd   : > { %s2186_s29 = scalar_select %p1975_p6, 1, 0 }
   0xe   : > { %p2182_p9 = scmp.eq.s32.totalorder %s1954_s22, 0  ;;  %p1982_p10 = pnand %p1359_p7, %p171_p8 }
   0xf   : > { %s1896_s6 = smov [#allocation2]   ;;  %s1800_s11 = scalar_lea.hbm %s2178_s2, 16384 }
  0x10   : > { %s2187_s30 = scalar_select %p1982_p10, 1, 0 }
  0x11   : > { %s183_s7 = sshll.u32 %s1896_s6, 4  ;;  %p1669_p11 = pneg %p1982_p10  ;;  %s184_s7 = int_to_ptr.vmem [resolvable:$true] %s183_s7 }
  0x12   : > { %p1801_p13 = scmp.ne.s32.totalorder %s2178_s2, %s1800_s11  ;;  %p1807_p3 = scmp.lt.u32.totalorder %s1800_s11, %s2178_s2 }
  0x13   : > { %p1990_p12 = pnand %p2182_p9, %p1669_p11 }
  0x15   : > { %p1802_p0 = pneg %p1990_p12 }
  0x17   : > { %p1803_p1 = pnand %p1802_p0, %p1801_p13 }
  0x19   : > { %p1804_p2 = pneg %p1803_p1 }
  0x1b   : > { %p1809_p4 = pnand %p1807_p3, %p1804_p2 }
  0x1d   : > { %1812 = shalt.err (!%p1809_p4)
}
  0x1e   : > { %s1813_s16 = scalar_lea.vmem %s184_s7, 16384  ;;  %p1821_p9 = scmp.lt.s32.totalorder %s184_s7, %s184_s7 }
  0x1f   : > { %p1814_p7 = scmp.ne.s32.totalorder %s184_s7, %s1813_s16  ;;  %p1822_p6 = scmp.lt.s32.totalorder %s1813_s16, %s1813_s16 }
  0x21   : > { %p1816_p8 = pnand %p1814_p7, %p1802_p0  ;;  %p1823_p5 = por %p1822_p6, %p1821_p9 }
  0x23   : > { %p1817_p11 = pneg %p1816_p8 }
  0x25   : > { %p1824_p10 = pnand %p1823_p5, %p1817_p11 }
  0x27   : > { %1827 = shalt.err (!%p1824_p10)
}
  0x28   : > { %s1897_s17 = smov 128   ;;  %s1898_s23 = smov 8  }
  0x29   : > { %1672 = dma.hbm_to_vmem [thread:$0]  (!%p1990_p12), %s2178_s2, 16384, %s184_s7, [#allocation3], %s1897_s17, %s1897_s17, %s1898_s23  }
  0x2a   : > { %p2189_p13 = scmp.ne.s32.totalorder %s2187_s30, 0 }
  0x2b   : > { %p2190_p1 = scmp.eq.s32.totalorder (!%p2189_p13), %s1954_s22, 0 }
  0x2c   : > { %216 = sbr.rel (%p2189_p13) target bundleno = 1854 (0x73e), region = 36 }
  0x33   : > { %1873 = dma.done.wait (%p2190_p1), [#allocation3], 16384   ;;  %p2191_p0 = pmov %p2190_p1 }
  0x34   : > { %v1899_v0 = vmov 0.0   ;;  %vm1900_vm0 = vmmov 0   ;;  %v1718_v1 = vld [vmem:[#allocation2] ss:$8 sps:$4 sm:$0xff]   ;;  %v1719_v2 = vld [vmem:[#allocation2 + $0x10] ss:$8 sps:$4 sm:$0xff]  }
  0x35   : > { %1875 = vsyncadd (%p2191_p0), [#allocation3], 4294950912  ;;  %1523 = vmatprep.subr.bf16.mxu0 %v1899_v0  ;;  %1539 = vmatprep.mubr.msk.bf16.mxu0 %vm1900_vm0, %v1899_v0  ;;  %p252_p5 = scmp.lt.s32.totalorder %s1954_s22, 2  ;;  %v1720_v3 = vld [vmem:[#allocation2 + $0x20] ss:$8 sps:$4 sm:$0xff]   ;;  %v1901_v59 = vmov 0  }
  0x36   : > { %1543 = vmatprep.subr.bf16.mxu1 %v1899_v0  ;;  %1559 = vmatprep.mubr.msk.bf16.mxu1 %vm1900_vm0, %v1899_v0  ;;  %v1726_v4 = vld [vmem:[#allocation2 + $0x80] ss:$8 sps:$4 sm:$0xff]   ;;  %v1721_v5 = vld [vmem:[#allocation2 + $0x30] ss:$8 sps:$4 sm:$0xff]   ;;  %v1744_v36 = vld [vmem:[#allocation2 + $0x184] ss:$8 sps:$4 sm:$0xff]  }
  0x37   : > { %1524 = vmatpush3.bf16.msra.mxu0 %v1718_v1  ;;  %s2026_s30 = scalar_select %p252_p5, %s1954_s22, 2  ;;  %1544 = vmatpush3.bf16.msra.mxu1 %v1726_v4  ;;  %v1727_v6 = vld [vmem:[#allocation2 + $0x90] ss:$8 sps:$4 sm:$0xff]   ;;  %v1722_v7 = vld [vmem:[#allocation2 + $0x40] ss:$8 sps:$4 sm:$0xff]  }
  0x38   : > { %1525 = vmatprep.subr.bf16.mxu0 %v1899_v0  ;;  %1545 = vmatprep.subr.bf16.mxu1 %v1899_v0  ;;  %v1728_v8 = vld [vmem:[#allocation2 + $0xa0] ss:$8 sps:$4 sm:$0xff]   ;;  %v1723_v9 = vld [vmem:[#allocation2 + $0x50] ss:$8 sps:$4 sm:$0xff]   ;;  %v1747_v37 = vld [vmem:[#allocation2 + $0x194] ss:$8 sps:$4 sm:$0xff]  }
  0x39   : > { %s1365_s6 = sshll.u32 %s2026_s30, 3  ;;  %v1729_v10 = vld [vmem:[#allocation2 + $0xb0] ss:$8 sps:$4 sm:$0xff]   ;;  %v1724_v11 = vld [vmem:[#allocation2 + $0x60] ss:$8 sps:$4 sm:$0xff]   ;;  %s1459_s23 = sshll.u32 %s2026_s30, 4 }
  0x3a   : > { %s255_s9 = scalar_lea.vmem %s2176_s0, %s1365_s6  ;;  %v1730_v12 = vld [vmem:[#allocation2 + $0xc0] ss:$8 sps:$4 sm:$0xff]   ;;  %v1725_v13 = vld [vmem:[#allocation2 + $0x70] ss:$8 sps:$4 sm:$0xff]   ;;  %v1750_v39 = vld [vmem:[#allocation2 + $0x1a4] ss:$8 sps:$4 sm:$0xff]   ;;  %s264_s7 = scalar_lea.vmem %s2181_s5, %s1459_s23 }
  0x3b   : > { %1526 = vmatpush3.bf16.msra.mxu0 %v1719_v2  ;;  %1546 = vmatpush3.bf16.msra.mxu1 %v1727_v6  ;;  %v266_v14 = vld [vmem:[%s255_s9] sm:$0xff]  ;;  %v1731_v15 = vld [vmem:[#allocation2 + $0xd0] ss:$8 sps:$4 sm:$0xff]   ;;  %v1753_v41 = vld [vmem:[#allocation2 + $0x1b4] ss:$8 sps:$4 sm:$0xff]   ;;  %s259_s10 = scalar_lea.vmem %s2177_s1, %s1365_s6  ;;  %s242_s15 = sand.u32 1, %s1886_s19  }
  0x3c   : > { %1527 = vmatprep.subr.bf16.mxu0 %v1899_v0  ;;  %1547 = vmatprep.subr.bf16.mxu1 %v1899_v0  ;;  %v284_v16 = vpack.c.bf16 %v266_v14, %v266_v14  ;;  %v1732_v17 = vld [vmem:[#allocation2 + $0xe0] ss:$8 sps:$4 sm:$0xff]   ;;  %v1733_v18 = vld [vmem:[#allocation2 + $0xf0] ss:$8 sps:$4 sm:$0xff]   ;;  %v1756_v43 = vld [vmem:[#allocation2 + $0x1c4] ss:$8 sps:$4 sm:$0xff]  }
  0x3d   : > { %v1734_v19 = vld [vmem:[#allocation2 + $0x100] ss:$8 sps:$4 sm:$0xff]   ;;  %v1735_v20 = vld [vmem:[#allocation2 + $0x110] ss:$8 sps:$4 sm:$0xff]   ;;  %v1759_v45 = vld [vmem:[#allocation2 + $0x1d4] ss:$8 sps:$4 sm:$0xff]  }
  0x3e   : > { %v1736_v21 = vld [vmem:[#allocation2 + $0x120] ss:$8 sps:$4 sm:$0xff]   ;;  %v1737_v22 = vld [vmem:[#allocation2 + $0x130] ss:$8 sps:$4 sm:$0xff]   ;;  %v1762_v47 = vld [vmem:[#allocation2 + $0x1e4] ss:$8 sps:$4 sm:$0xff]  }
  0x3f   : > { %1528 = vmatpush3.bf16.msra.mxu0 %v1720_v3  ;;  %1548 = vmatpush3.bf16.msra.mxu1 %v1728_v8  ;;  %v1738_v23 = vld [vmem:[#allocation2 + $0x140] ss:$8 sps:$4 sm:$0xff]   ;;  %v1739_v24 = vld [vmem:[#allocation2 + $0x150] ss:$8 sps:$4 sm:$0xff]   ;;  %v1765_v57 = vld [vmem:[#allocation2 + $0x1f4] ss:$8 sps:$4 sm:$0xff]  }
  0x40   : > { %1529 = vmatprep.subr.bf16.mxu0 %v1899_v0  ;;  %1549 = vmatprep.subr.bf16.mxu1 %v1899_v0  ;;  %v1369_v25 = vld [vmem:[%s2179_s3] ss:$0 sm:$0xff]  ;;  %v1741_v34 = vld [vmem:[#allocation2 + $0x170] ss:$8 sps:$4 sm:$0xff]   ;;  %v1379_v49 = vld [vmem:[%s2179_s3 + $0x2] ss:$0 sm:$0xff] }
  0x41   : > { %v1740_v33 = vld [vmem:[#allocation2 + $0x160] ss:$8 sps:$4 sm:$0xff]   ;;  %v1745_v38 = vld [vmem:[#allocation2 + $0x190] ss:$8 sps:$4 sm:$0xff]   ;;  %v1389_v62 = vld [vmem:[%s2179_s3 + $0x4] ss:$0 sm:$0xff] }
  0x42   : > { %v1742_v35 = vld [vmem:[#allocation2 + $0x180] ss:$8 sps:$4 sm:$0xff]   ;;  %v1751_v42 = vld [vmem:[#allocation2 + $0x1b0] ss:$8 sps:$4 sm:$0xff]   ;;  %s1364_s16 = sshll.u32 %s242_s15, 3  ;;  %s1456_s25 = sshll.u32 %s1954_s22, 7 }
  0x43   : > { %1530 = vmatpush3.bf16.msra.mxu0 %v1721_v5  ;;  %1550 = vmatpush3.bf16.msra.mxu1 %v1729_v10  ;;  %v1748_v40 = vld [vmem:[#allocation2 + $0x1a0] ss:$8 sps:$4 sm:$0xff]   ;;  %v1757_v46 = vld [vmem:[#allocation2 + $0x1d0] ss:$8 sps:$4 sm:$0xff]   ;;  %s244_s26 = scalar_lea.vmem [#allocation5], %s1364_s16  ;;  %s1229_s30 = scalar_lea.sflag [#allocation4], %s242_s15 }
  0x44   : > { %1531 = vmatprep.subr.bf16.mxu0 %v1899_v0  ;;  %1551 = vmatprep.subr.bf16.mxu1 %v1899_v0  ;;  %v1754_v44 = vld [vmem:[#allocation2 + $0x1c0] ss:$8 sps:$4 sm:$0xff]   ;;  %v1763_v58 = vld [vmem:[#allocation2 + $0x1f0] ss:$8 sps:$4 sm:$0xff]   ;;  %p2192_p9 = scmp.ne.s32.totalorder %s2185_s28, 0  ;;  %s1902_s6 = smov [#allocation5]  }
  0x45   : > { %v1760_v48 = vld [vmem:[#allocation2 + $0x1e0] ss:$8 sps:$4 sm:$0xff]   ;;  %v1767_v61 = vld [vmem:[#allocation2 + $0x210] ss:$8 sps:$4 sm:$0xff]   ;;  %s1832_s11 = sshll.u32 %s1902_s6, 4  ;;  %s1833_s11 = int_to_ptr.vmem [resolvable:$false] %s1832_s11 }
  0x46   : > { %v1766_v60 = vld [vmem:[#allocation2 + $0x200] ss:$8 sps:$4 sm:$0xff]   ;;  %s1834_s12 = scalar_lea.vmem %s1833_s11, 256 }
  0x47   : > { %1532 = vmatpush3.bf16.msra.mxu0 %v1722_v7  ;;  %1552 = vmatpush3.bf16.msra.mxu1 %v1730_v12  ;;  %v1768_v6 = vld [vmem:[#allocation2 + $0x220] ss:$8 sps:$4 sm:$0xff]   ;;  %v1769_v7 = vld [vmem:[#allocation2 + $0x230] ss:$8 sps:$4 sm:$0xff]  }
  0x48   : > { %1533 = vmatprep.subr.bf16.mxu0 %v1899_v0  ;;  %1553 = vmatprep.subr.bf16.mxu1 %v1899_v0  ;;  %v1770_v8 = vld [vmem:[#allocation2 + $0x240] ss:$8 sps:$4 sm:$0xff]  }
  0x49   : > { %v1772_v10 = vld [vmem:[#allocation2 + $0x260] ss:$8 sps:$4 sm:$0xff]  }
  0x4a   : > { %v1774_v12 = vld [vmem:[#allocation2 + $0x280] ss:$8 sps:$4 sm:$0xff]  }
  0x4b   : > { %1534 = vmatpush3.bf16.msra.mxu0 %v1723_v9  ;;  %1554 = vmatpush3.bf16.msra.mxu1 %v1731_v15  ;;  %v1771_v9 = vld [vmem:[#allocation2 + $0x250] ss:$8 sps:$4 sm:$0xff]   ;;  %v1776_v14 = vld [vmem:[#allocation2 + $0x2a0] ss:$8 sps:$4 sm:$0xff]  }
  0x4c   : > { %1535 = vmatprep.subr.bf16.mxu0 %v1899_v0  ;;  %1555 = vmatprep.subr.bf16.mxu1 %v1899_v0  ;;  %v1777_v15 = vld [vmem:[#allocation2 + $0x2b0] ss:$8 sps:$4 sm:$0xff]  }
  0x4f   : > { %1536 = vmatpush3.bf16.msra.mxu0 %v1724_v11  ;;  %1556 = vmatpush3.bf16.msra.mxu1 %v1732_v17  ;;  %v1773_v11 = vld [vmem:[#allocation2 + $0x270] ss:$8 sps:$4 sm:$0xff]  }
  0x50   : > { %1537 = vmatprep.subr.bf16.mxu0 %v1899_v0  ;;  %1557 = vmatprep.subr.bf16.mxu1 %v1899_v0  ;;  %v1779_v17 = vld [vmem:[#allocation2 + $0x2d0] ss:$8 sps:$4 sm:$0xff]  }
  0x53   : > { %1538 = vmatpush3.bf16.msra.mxu0 %v1725_v13  ;;  %1558 = vmatpush3.bf16.msra.mxu1 %v1733_v18  ;;  %v1775_v13 = vld [vmem:[#allocation2 + $0x290] ss:$8 sps:$4 sm:$0xff]   ;;  %v1780_v18 = vld [vmem:[#allocation2 + $0x2e0] ss:$8 sps:$4 sm:$0xff]  }
  0x54   : > { %1563 = vmatprep.subr.bf16.mxu0 %v1899_v0  ;;  %720 = vmatprep.subr.bf16.mxu1 %v1744_v36 }
  0x56   : > { %1540 = vmatmul.mubr.bf16.vlgmr.msra.gmra.mrb[0].mxu0 %v284_v16  ;;  %v1778_v16 = vld [vmem:[#allocation2 + $0x2c0] ss:$8 sps:$4 sm:$0xff]  }
  0x57   : > { %1579 = vmatprep.mubr.msk.bf16.mxu0 %vm1900_vm0, %v1899_v0  ;;  %1564 = vmatpush3.bf16.msra.mxu0 %v1734_v19  ;;  %v630_v19 = vlaneseq }
  0x58   : > { %1565 = vmatprep.subr.bf16.mxu0 %v1899_v0 }
  0x5b   : > { %1566 = vmatpush3.bf16.msra.mxu0 %v1735_v20  ;;  %v631_v20 = vshrl.u32 %v630_v19, 7 }
  0x5c   : > { %1567 = vmatprep.subr.bf16.mxu0 %v1899_v0 }
  0x5f   : > { %1568 = vmatpush3.bf16.msra.mxu0 %v1736_v21  ;;  %v632_v21 = vsub.s32 0, %v631_v20 }
  0x60   : > { %1569 = vmatprep.subr.bf16.mxu0 %v1899_v0 }
  0x63   : > { %1570 = vmatpush3.bf16.msra.mxu0 %v1737_v22  ;;  %v1398_v22 = vld [vmem:[%s2179_s3 + $0x6] sm:$0x3] }
  0x64   : > { %1571 = vmatprep.subr.bf16.mxu0 %v1899_v0 }
  0x67   : > { %1572 = vmatpush3.bf16.msra.mxu0 %v1738_v23  ;;  %v636_v23 = vsub.s32 1, %v631_v20 }
  0x68   : > { %1573 = vmatprep.subr.bf16.mxu0 %v1899_v0 }
  0x6b   : > { %1574 = vmatpush3.bf16.msra.mxu0 %v1739_v24  ;;  %v633_v24 = vrot.slane %v1398_v22, %v632_v21 }
  0x6c   : > { %1575 = vmatprep.subr.bf16.mxu0 %v1899_v0 }
  0x6f   : > { %1576 = vmatpush3.bf16.msra.mxu0 %v1740_v33 }
  0x70   : > { %1577 = vmatprep.subr.bf16.mxu0 %v1899_v0 }
  0x73   : > { %1578 = vmatpush3.bf16.msra.mxu0 %v1741_v34  ;;  %v763_v34 = vld [vmem:[%s259_s10] sm:$0xff]  ;;  %s2134_s10 = scalar_lea.hbm %s2180_s4, %s1456_s25 }
  0x74   : > { %1583 = vmatprep.subr.bf16.mxu0 %v1899_v0 }
 0x129   : > { %v373_v26 = vpop.f32.mrb[0].mxu0 }
 0x12a   : > { %v374_v27 = vadd.f32 %v1369_v25, %v373_v26  ;;  %v1541_v28 = vpop.f32.mrb[1].mxu0  ;;  %v637_v25 = vrot.slane %v1398_v22, %v636_v23 }
 0x12b   : > { %v376_v29 = vpop.f32.mrb[2].mxu0 }
 0x12c   : > { %v379_v30 = vmax.f32 %v374_v27, 0.0  ;;  %v1542_v31 = vpop.f32.mrb[3].mxu0 }
 0x12e   : > { %v399_v32 = vpack.c.bf16 %v379_v30, %v379_v30 }
 0x130   : > { %1560 = vmatmul.mubr.bf16.vlgmr.msra.gmra.mrb[0].mxu1 %v399_v32 }
 0x131   : > { %721 = vmatpush1.bf16.msra.mxu1 %v1742_v35  ;;  %752 = vmatprep.mubr.bf16.mxu1 %v1901_v59  ;;  %v1794_v59 = vld [vmem:[#allocation2 + $0x3c0] ss:$8 sps:$4 sm:$0xff]  }
 0x132   : > { %722 = vmatprep.subr.bf16.mxu1 %v1747_v37 }
 0x135   : > { %723 = vmatpush1.bf16.msra.mxu1 %v1745_v38 }
 0x136   : > { %724 = vmatprep.subr.bf16.mxu1 %v1750_v39  ;;  %v1781_v39 = vld [vmem:[#allocation2 + $0x2f0] ss:$8 sps:$4 sm:$0xff]  }
 0x139   : > { %725 = vmatpush1.bf16.msra.mxu1 %v1748_v40  ;;  %v1782_v40 = vld [vmem:[#allocation2 + $0x300] ss:$8 sps:$4 sm:$0xff]  }
 0x13a   : > { %726 = vmatprep.subr.bf16.mxu1 %v1753_v41  ;;  %v1783_v41 = vld [vmem:[#allocation2 + $0x310] ss:$8 sps:$4 sm:$0xff]  }
 0x13d   : > { %727 = vmatpush1.bf16.msra.mxu1 %v1751_v42  ;;  %v1784_v42 = vld [vmem:[#allocation2 + $0x320] ss:$8 sps:$4 sm:$0xff]  }
 0x13e   : > { %728 = vmatprep.subr.bf16.mxu1 %v1756_v43  ;;  %v1785_v43 = vld [vmem:[#allocation2 + $0x330] ss:$8 sps:$4 sm:$0xff]  }
 0x141   : > { %729 = vmatpush1.bf16.msra.mxu1 %v1754_v44  ;;  %v1786_v44 = vld [vmem:[#allocation2 + $0x340] ss:$8 sps:$4 sm:$0xff]  }
 0x142   : > { %730 = vmatprep.subr.bf16.mxu1 %v1759_v45  ;;  %v1787_v45 = vld [vmem:[#allocation2 + $0x350] ss:$8 sps:$4 sm:$0xff]  }
 0x145   : > { %731 = vmatpush1.bf16.msra.mxu1 %v1757_v46  ;;  %v1416_v46 = vld [vmem:[%s2179_s3 + $0x8] ss:$0 sm:$0xff] }
 0x146   : > { %732 = vmatprep.subr.bf16.mxu1 %v1762_v47 }
 0x149   : > { %733 = vmatpush1.bf16.msra.mxu1 %v1760_v48 }
 0x14a   : > { %734 = vmatprep.subr.bf16.mxu1 %v1765_v57  ;;  %v1792_v57 = vld [vmem:[#allocation2 + $0x3a0] ss:$8 sps:$4 sm:$0xff]  }
 0x14d   : > { %735 = vmatpush1.bf16.msra.mxu1 %v1763_v58  ;;  %v1793_v58 = vld [vmem:[#allocation2 + $0x3b0] ss:$8 sps:$4 sm:$0xff]  }
 0x14e   : > { %1603 = vmatprep.subr.bf16.mxu1 %v1899_v0 }
 0x203   : > { %v488_v50 = vpop.f32.mrb[0].mxu1 }
 0x204   : > { %v489_v51 = vadd.f32 %v1379_v49, %v488_v50  ;;  %v1561_v52 = vpop.f32.mrb[1].mxu1 }
 0x205   : > { %v491_v53 = vpop.f32.mrb[2].mxu1 }
 0x206   : > { %v494_v54 = vmax.f32 %v489_v51, 0.0  ;;  %v1562_v55 = vpop.f32.mrb[3].mxu1  ;;  %v1788_v53 = vld [vmem:[#allocation2 + $0x360] ss:$8 sps:$4 sm:$0xff]  }
 0x207   : > { %v1790_v55 = vld [vmem:[#allocation2 + $0x380] ss:$8 sps:$4 sm:$0xff]  }
 0x208   : > { %v514_v56 = vpack.c.bf16 %v494_v54, %v494_v54  ;;  %v1789_v54 = vld [vmem:[#allocation2 + $0x370] ss:$8 sps:$4 sm:$0xff]  }
 0x20a   : > { %1580 = vmatmul.mubr.bf16.vlgmr.msra.gmra.mrb[4].mxu0 %v514_v56  ;;  %v1791_v56 = vld [vmem:[#allocation2 + $0x390] ss:$8 sps:$4 sm:$0xff]  }
 0x20b   : > { %1599 = vmatprep.mubr.msk.bf16.mxu0 %vm1900_vm0, %v1899_v0  ;;  %1584 = vmatpush3.bf16.msra.mxu0 %v1766_v60  ;;  %v1795_v60 = vld [vmem:[#allocation2 + $0x3d0] ss:$8 sps:$4 sm:$0xff]  }
 0x20c   : > { %1585 = vmatprep.subr.bf16.mxu0 %v1899_v0 }
 0x20f   : > { %1586 = vmatpush3.bf16.msra.mxu0 %v1767_v61  ;;  %v1426_v61 = vld [vmem:[%s2179_s3 + $0xa] ss:$0 sm:$0xff] }
 0x210   : > { %1587 = vmatprep.subr.bf16.mxu0 %v1899_v0 }
 0x213   : > { %1588 = vmatpush3.bf16.msra.mxu0 %v1768_v6  ;;  %v1796_v6 = vld [vmem:[#allocation2 + $0x3e0] ss:$8 sps:$4 sm:$0xff]  }
 0x214   : > { %1589 = vmatprep.subr.bf16.mxu0 %v1899_v0 }
 0x217   : > { %1590 = vmatpush3.bf16.msra.mxu0 %v1769_v7  ;;  %v1797_v7 = vld [vmem:[#allocation2 + $0x3f0] ss:$8 sps:$4 sm:$0xff]  }
 0x218   : > { %1591 = vmatprep.subr.bf16.mxu0 %v1899_v0 }
 0x21b   : > { %1592 = vmatpush3.bf16.msra.mxu0 %v1770_v8  ;;  %v1436_v8 = vld [vmem:[%s2179_s3 + $0xc] ss:$0 sm:$0xff] }
 0x21c   : > { %1593 = vmatprep.subr.bf16.mxu0 %v1899_v0 }
 0x21f   : > { %1594 = vmatpush3.bf16.msra.mxu0 %v1771_v9 }
 0x220   : > { %1595 = vmatprep.subr.bf16.mxu0 %v1899_v0 }
 0x223   : > { %1596 = vmatpush3.bf16.msra.mxu0 %v1772_v10 }
 0x224   : > { %1597 = vmatprep.subr.bf16.mxu0 %v1899_v0 }
 0x227   : > { %1598 = vmatpush3.bf16.msra.mxu0 %v1773_v11 }
 0x228   : > { %1623 = vmatprep.subr.bf16.mxu0 %v1899_v0 }
 0x2dd   : > { %v603_v63 = vpop.f32.mrb[4].mxu0 }
 0x2de   : > { %v604_v1 = vadd.f32 %v1389_v62, %v603_v63  ;;  %v1581_v2 = vpop.f32.mrb[5].mxu0 }
 0x2df   : > { %v606_v3 = vpop.f32.mrb[6].mxu0 }
 0x2e0   : > { %v628_v4 = vpack.c.bf16 %v604_v1, %v604_v1  ;;  %v1582_v5 = vpop.f32.mrb[7].mxu0 }
 0x2e2   : > { %753 = vmatmul.mubr.bf16.vlgmr.msra.gmra.mrb[4].mxu1 %v628_v4 }
 0x2e3   : > { %1619 = vmatprep.mubr.msk.bf16.mxu1 %vm1900_vm0, %v1899_v0  ;;  %1604 = vmatpush3.bf16.msra.mxu1 %v1774_v12 }
 0x2e4   : > { %1605 = vmatprep.subr.bf16.mxu1 %v1899_v0 }
 0x2e7   : > { %1606 = vmatpush3.bf16.msra.mxu1 %v1775_v13 }
 0x2e8   : > { %1607 = vmatprep.subr.bf16.mxu1 %v1899_v0 }
 0x2eb   : > { %1608 = vmatpush3.bf16.msra.mxu1 %v1776_v14 }
 0x2ec   : > { %1609 = vmatprep.subr.bf16.mxu1 %v1899_v0 }
 0x2ef   : > { %1610 = vmatpush3.bf16.msra.mxu1 %v1777_v15 }
 0x2f0   : > { %1611 = vmatprep.subr.bf16.mxu1 %v1899_v0 }
 0x2f3   : > { %1612 = vmatpush3.bf16.msra.mxu1 %v1778_v16 }
 0x2f4   : > { %1613 = vmatprep.subr.bf16.mxu1 %v1899_v0 }
 0x2f7   : > { %1614 = vmatpush3.bf16.msra.mxu1 %v1779_v17 }
 0x2f8   : > { %1615 = vmatprep.subr.bf16.mxu1 %v1899_v0 }
 0x2fb   : > { %1616 = vmatpush3.bf16.msra.mxu1 %v1780_v18 }
 0x2fc   : > { %1617 = vmatprep.subr.bf16.mxu1 %v1899_v0 }
 0x2ff   : > { %1618 = vmatpush3.bf16.msra.mxu1 %v1781_v39 }
 0x300   : > { %1643 = vmatprep.subr.bf16.mxu1 %v1899_v0 }
 0x3b5   : > { %v754_v26 = vpop.f32.mrb[4].mxu1 }
 0x3b6   : > { %v755_v27 = vadd.f32 %v754_v26, %v633_v24  ;;  %v756_v28 = vpop.f32.mrb[5].mxu1 }
 0x3b7   : > { %v757_v29 = vadd.f32 %v756_v28, %v637_v25  ;;  %v758_v30 = vpop.f32.mrb[6].mxu1 }
 0x3b8   : > { %761 = vst [vmem:[%s264_s7] sm:$0xff] %v755_v27  ;;  %v759_v31 = vpop.f32.mrb[7].mxu1 }
 0x3b9   : > { %762 = vst [vmem:[%s264_s7 + $0x8] sm:$0xff] %v757_v29  ;;  %v764_v32 = vmul.f32 0.5, %v757_v29  ;;  %s1247_s7 = sshll.u32 %s244_s26, 4  ;;  %s2136_s7 = int_to_ptr.vmem [resolvable:$true] %s1247_s7 }
 0x3ba   : > { %s1828_s22 = scalar_lea.vmem %s2136_s7, 128  ;;  %p1835_p2 = scmp.lt.s32.totalorder %s2136_s7, %s1833_s11 }
 0x3bb   : > { %v765_v33 = vmul.f32 1.442695, %v764_v32  ;;  %p1829_p6 = scmp.ne.s32.totalorder %s2136_s7, %s1828_s22  ;;  %p1836_p3 = scmp.lt.s32.totalorder %s1834_s12, %s1828_s22 }
 0x3bd   : > { %1798 = vpow2.f32 %v765_v33  ;;  %p1830_p10 = pnand %p1829_p6, %p2192_p9  ;;  %p1837_p4 = por %p1836_p3, %p1835_p2 }
 0x3bf   : > { %p1831_p12 = pneg %p1830_p10 }
 0x3c1   : > { %p1838_p7 = pnand %p1837_p4, %p1831_p12 }
 0x3c7   : > { %v1799_v35 = vpop.eup %1798 }
 0x3c8   : > { %v767_v36 = vmul.f32 %v1799_v35, %v763_v34 }
 0x3ca   : > { %v768_v37 = vadd.f32 %v767_v36, %v755_v27 }
 0x3cc   : > { %v788_v38 = vpack.c.bf16 %v768_v37, %v768_v37 }
 0x3ce   : > { %1600 = vmatmul.mubr.bf16.vlgmr.msra.gmra.mrb[8].mxu0 %v788_v38 }
 0x3cf   : > { %1639 = vmatprep.mubr.msk.bf16.mxu0 %vm1900_vm0, %v1899_v0  ;;  %1624 = vmatpush3.bf16.msra.mxu0 %v1782_v40 }
 0x3d0   : > { %1625 = vmatprep.subr.bf16.mxu0 %v1899_v0 }
 0x3d3   : > { %1626 = vmatpush3.bf16.msra.mxu0 %v1783_v41 }
 0x3d4   : > { %1627 = vmatprep.subr.bf16.mxu0 %v1899_v0 }
 0x3d7   : > { %1628 = vmatpush3.bf16.msra.mxu0 %v1784_v42 }
 0x3d8   : > { %1629 = vmatprep.subr.bf16.mxu0 %v1899_v0 }
 0x3db   : > { %1630 = vmatpush3.bf16.msra.mxu0 %v1785_v43 }
 0x3dc   : > { %1631 = vmatprep.subr.bf16.mxu0 %v1899_v0 }
 0x3df   : > { %1632 = vmatpush3.bf16.msra.mxu0 %v1786_v44 }
 0x3e0   : > { %1633 = vmatprep.subr.bf16.mxu0 %v1899_v0 }
 0x3e3   : > { %1634 = vmatpush3.bf16.msra.mxu0 %v1787_v45 }
 0x3e4   : > { %1635 = vmatprep.subr.bf16.mxu0 %v1899_v0 }
 0x3e7   : > { %1636 = vmatpush3.bf16.msra.mxu0 %v1788_v53 }
 0x3e8   : > { %1637 = vmatprep.subr.bf16.mxu0 %v1899_v0 }
 0x3eb   : > { %1638 = vmatpush3.bf16.msra.mxu0 %v1789_v54 }
 0x4a1   : > { %v877_v47 = vpop.f32.mrb[8].mxu0 }
 0x4a2   : > { %v878_v48 = vadd.f32 %v1416_v46, %v877_v47  ;;  %v1601_v49 = vpop.f32.mrb[9].mxu0 }
 0x4a3   : > { %v880_v50 = vpop.f32.mrb[10].mxu0 }
 0x4a4   : > { %v902_v51 = vpack.c.bf16 %v878_v48, %v878_v48  ;;  %v1602_v52 = vpop.f32.mrb[11].mxu0 }
 0x4a6   : > { %1620 = vmatmul.mubr.bf16.vlgmr.msra.gmra.mrb[8].mxu1 %v902_v51 }
 0x4a7   : > { %1659 = vmatprep.mubr.msk.bf16.mxu1 %vm1900_vm0, %v1899_v0  ;;  %1644 = vmatpush3.bf16.msra.mxu1 %v1790_v55 }
 0x4a8   : > { %1645 = vmatprep.subr.bf16.mxu1 %v1899_v0 }
 0x4ab   : > { %1646 = vmatpush3.bf16.msra.mxu1 %v1791_v56 }
 0x4ac   : > { %1647 = vmatprep.subr.bf16.mxu1 %v1899_v0 }
 0x4af   : > { %1648 = vmatpush3.bf16.msra.mxu1 %v1792_v57 }
 0x4b0   : > { %1649 = vmatprep.subr.bf16.mxu1 %v1899_v0 }
 0x4b3   : > { %1650 = vmatpush3.bf16.msra.mxu1 %v1793_v58 }
 0x4b4   : > { %1651 = vmatprep.subr.bf16.mxu1 %v1899_v0 }
 0x4b7   : > { %1652 = vmatpush3.bf16.msra.mxu1 %v1794_v59 }
 0x4b8   : > { %1653 = vmatprep.subr.bf16.mxu1 %v1899_v0 }
 0x4bb   : > { %1654 = vmatpush3.bf16.msra.mxu1 %v1795_v60 }
 0x4bc   : > { %1655 = vmatprep.subr.bf16.mxu1 %v1899_v0 }
 0x4bf   : > { %1656 = vmatpush3.bf16.msra.mxu1 %v1796_v6 }
 0x4c0   : > { %1657 = vmatprep.subr.bf16.mxu1 %v1899_v0  ;;  %v1446_v0 = vld [vmem:[%s2179_s3 + $0xe] ss:$0 sm:$0xff] }
 0x4c3   : > { %1658 = vmatpush3.bf16.msra.mxu1 %v1797_v7 }
 0x579   : > { %v991_v62 = vpop.f32.mrb[8].mxu1 }
 0x57a   : > { %v992_v63 = vadd.f32 %v1426_v61, %v991_v62  ;;  %v1621_v1 = vpop.f32.mrb[9].mxu1 }
 0x57b   : > { %v994_v2 = vpop.f32.mrb[10].mxu1 }
 0x57c   : > { %v997_v3 = vmax.f32 %v992_v63, 0.0  ;;  %v1622_v4 = vpop.f32.mrb[11].mxu1 }
 0x57e   : > { %v1017_v5 = vpack.c.bf16 %v997_v3, %v997_v3 }
 0x580   : > { %1640 = vmatmul.mubr.bf16.vlgmr.msra.gmra.mrb[12].mxu0 %v1017_v5 }
 0x653   : > { %v1106_v9 = vpop.f32.mrb[12].mxu0 }
 0x654   : > { %v1107_v10 = vadd.f32 %v1436_v8, %v1106_v9  ;;  %v1641_v11 = vpop.f32.mrb[13].mxu0 }
 0x655   : > { %v1109_v12 = vpop.f32.mrb[14].mxu0 }
 0x656   : > { %v1112_v13 = vmax.f32 %v1107_v10, 0.0  ;;  %v1642_v14 = vpop.f32.mrb[15].mxu0 }
 0x658   : > { %v1132_v15 = vpack.c.bf16 %v1112_v13, %v1112_v13 }
 0x65a   : > { %1660 = vmatmul.mubr.bf16.vlgmr.msra.gmra.mrb[12].mxu1 %v1132_v15 }
 0x72d   : > { %v1221_v16 = vpop.f32.mrb[12].mxu1 }
 0x72e   : > { %v1222_v17 = vadd.f32 %v1446_v0, %v1221_v16  ;;  %v1661_v18 = vpop.f32.mrb[13].mxu1 }
 0x72f   : > { %v1224_v19 = vpop.f32.mrb[14].mxu1 }
 0x730   : > { %1227 = vst [vmem:[%s244_s26] sm:$0xff] %v1222_v17  ;;  %v1662_v20 = vpop.f32.mrb[15].mxu1 }
 0x731   : > { %1841 = shalt.err (!%p1838_p7)
}
 0x732   : > { %s1842_s13 = scalar_lea.hbm %s2134_s10, 128  ;;  %s1846_s16 = scalar_lea.hbm %s2180_s4, 384 }
 0x733   : > { %p1843_p8 = scmp.ne.s32.totalorder %s2134_s10, %s1842_s13  ;;  %p1847_p1 = scmp.lt.u32.totalorder %s2134_s10, %s2180_s4 }
 0x734   : > { %p1848_p0 = scmp.lt.u32.totalorder %s1846_s16, %s1842_s13  ;;  %p1850_p6 = scmp.lt.u32.totalorder %s1842_s13, %s2134_s10 }
 0x735   : > { %p1844_p11 = pnand %p1843_p8, %p2192_p9 }
 0x736   : > { %p1849_p5 = por %p1848_p0, %p1847_p1 }
 0x737   : > { %p1845_p13 = pneg %p1844_p11 }
 0x738   : > { %p1851_p10 = por %p1850_p6, %p1849_p5 }
 0x73a   : > { %p1852_p12 = pnand %p1851_p10, %p1845_p13 }
 0x73c   : > { %1855 = shalt.err (!%p1852_p12)
}
 0x73d   : > { %1667 = dma.vmem_to_hbm [thread:$0]  (%p2192_p9), %s2136_s7, 128, %s2134_s10, %s1229_s30  }
 0x73e PF: > { %p1679_p2 = scmp.ge.s32.totalorder %s1894_s21, 2  ;;  %s1262_s25 = sand.u32 1, %s1882_s18  }
 0x73f   : > { %p2193_p3 = scmp.ne.s32.totalorder %s2186_s29, 0  ;;  %s1263_s26 = scalar_lea.sflag [#allocation4], %s1262_s25 }
 0x741   : > { %p1674_p4 = pnand %p1679_p2, %p2193_p3 }
 0x743   : > { %1877 = dma.done.wait (!%p1674_p4), %s1263_s26, 128  }
 0x744   : > { %1879 = vsyncadd (!%p1674_p4), %s1263_s26, 4294967168  ;;  %p17_p7 = scmp.ge.s32.totalorder %s1958_s24, 5   ;;  %s2194_s18 = smov %s1886_s19 }
 0x745   : > { %s2195_s19 = smov %s1890_s20  ;;  %s2196_s20 = smov %s1969_s27 }
 0x746   : > { %s2197_s21 = smov %s1958_s24  ;;  %19 = sbr.rel (!%p17_p7) target bundleno = 4 (0x4), region = 105 }
 0x74d   :  { %1276 = vsyncpa [#allocation3], 1 }
 0x74e   :  { %1278 = vsyncpa [#allocation3 + $0x1], 1 }
 0x74f   :  { %1279 = vsyncpa [#allocation4], 1 }
 0x750   :  { %1281 = vsyncpa [#allocation4 + $0x1], 1 }

</bundles_post_ra>
